<compile_context>
chip_gen: v7x
topology: tpu7x:2x2x1
jax: 0.10.0
libtpu: 0.0.40
codegen_flags: <defaults>
</compile_context>

<pallas_src>
import numpy as np
import jax
import jax.numpy as jnp
from jax.experimental import pallas as pl
from jax.experimental.pallas import tpu as pltpu


# ----------------------------------------------------------------------------
# Small helpers (glue)
# ----------------------------------------------------------------------------
def _round_up(x, m):
    return ((x + m - 1) // m) * m


def _largest_tile(dim, cap=512):
    """Largest multiple of 128 that divides `dim` (dim % 128 == 0) and is <= cap."""
    best = 128
    t = 128
    while t <= min(dim, cap):
        if dim % t == 0:
            best = t
        t += 128
    return best


def _pick_tn(Np, cap=512):
    for t in (512, 256, 128):
        if t <= cap and Np % t == 0:
            return t
    return 128


def _pad2d(x, rows, cols):
    r, c = x.shape
    if r == rows and c == cols:
        return x
    return jnp.pad(x, ((0, rows - r), (0, cols - c)))


# ----------------------------------------------------------------------------
# Pallas kernel 1: tiled bf16 GEMM + bias (+ residual) (+ ReLU), f32 accumulation
# ----------------------------------------------------------------------------
def _make_gemm_kernel(relu, add_res):
    """Multi-K-step kernel with a VMEM f32 accumulator."""
    def kernel(*refs):
        if add_res:
            a_ref, b_ref, bias_ref, res_ref, o_ref, acc_ref = refs
        else:
            a_ref, b_ref, bias_ref, o_ref, acc_ref = refs

        k = pl.program_id(2)

        @pl.when(k == 0)
        def _():
            acc_ref[...] = jnp.zeros_like(acc_ref)

        acc_ref[...] += jnp.dot(a_ref[...], b_ref[...],
                                preferred_element_type=jnp.float32)

        @pl.when(k == pl.num_programs(2) - 1)
        def _():
            out = acc_ref[...] + bias_ref[...]
            if add_res:
                out = out + res_ref[...].astype(jnp.float32)
            if relu:
                out = jnp.maximum(out, 0.0)
            o_ref[...] = out.astype(o_ref.dtype)

    return kernel


def _make_gemm_kernel_single(relu, add_res):
    """Single-K-step kernel: no scratch accumulator, store epilogue directly."""
    def kernel(*refs):
        if add_res:
            a_ref, b_ref, bias_ref, res_ref, o_ref = refs
        else:
            a_ref, b_ref, bias_ref, o_ref = refs
        out = jnp.dot(a_ref[...], b_ref[...],
                      preferred_element_type=jnp.float32) + bias_ref[...]
        if add_res:
            out = out + res_ref[...].astype(jnp.float32)
        if relu:
            out = jnp.maximum(out, 0.0)
        o_ref[...] = out.astype(o_ref.dtype)

    return kernel


def gemm_bias_act(a, w_p, bias_p, cout, residual=None, relu=True):
    """act(a @ w_p + bias [+ residual]) on the MXU.

    a:      (M, K)  activations (cast to bf16; K zero-padded to w_p's Kp)
    w_p:    (Kp, Np) pre-padded bf16 weights (Kp, Np multiples of 128)
    bias_p: (1, Np)  f32 folded-BN bias
    residual: optional (M, cout) activation added before ReLU
    Returns (M, cout) bf16.
    """
    M, K = a.shape
    Kp, Np = w_p.shape

    # Row padding: only to the sublane multiple for small M (deep layers have tiny M).
    if M <= 256:
        Mp = _round_up(M, 16)
        tm = Mp
    else:
        Mp = _round_up(M, 128)
        tm = 256 if Mp % 256 == 0 else 128
    # Larger K tiles when M is small (deep 1x1 convs) -> fewer grid steps.
    tk_cap = 1024 if Mp <= 256 else 512
    tk = _largest_tile(Kp, tk_cap)
    tn = _pick_tn(Np)
    nk = Kp // tk

    a_p = _pad2d(a.astype(jnp.bfloat16), Mp, Kp)
    add_res = residual is not None
    args = [a_p, w_p, bias_p]
    if add_res:
        r_p = _pad2d(residual.astype(jnp.bfloat16), Mp, Np)
        args.append(r_p)

    flops = 2 * Mp * Np * Kp
    bytes_accessed = (a_p.size * 2 + w_p.size * 2 + bias_p.size * 4
                      + Mp * Np * 2 + (Mp * Np * 2 if add_res else 0))
    cost = pl.CostEstimate(flops=flops, transcendentals=0,
                           bytes_accessed=bytes_accessed)

    if nk == 1:
        in_specs = [pl.BlockSpec((tm, tk), lambda i, j: (i, 0)),
                    pl.BlockSpec((tk, tn), lambda i, j: (0, j)),
                    pl.BlockSpec((1, tn), lambda i, j: (0, j))]
        if add_res:
            in_specs.append(pl.BlockSpec((tm, tn), lambda i, j: (i, j)))
        out = pl.pallas_call(
            _make_gemm_kernel_single(relu, add_res),
            out_shape=jax.ShapeDtypeStruct((Mp, Np), jnp.bfloat16),
            grid_spec=pltpu.PrefetchScalarGridSpec(
                num_scalar_prefetch=0,
                grid=(Mp // tm, Np // tn),
                in_specs=in_specs,
                out_specs=pl.BlockSpec((tm, tn), lambda i, j: (i, j))),
            compiler_params=pltpu.CompilerParams(
                dimension_semantics=("parallel", "parallel")),
            cost_estimate=cost,
        )(*args)
    else:
        in_specs = [pl.BlockSpec((tm, tk), lambda i, j, k: (i, k)),
                    pl.BlockSpec((tk, tn), lambda i, j, k: (k, j)),
                    pl.BlockSpec((1, tn), lambda i, j, k: (0, j))]
        if add_res:
            in_specs.append(pl.BlockSpec((tm, tn), lambda i, j, k: (i, j)))
        out = pl.pallas_call(
            _make_gemm_kernel(relu, add_res),
            out_shape=jax.ShapeDtypeStruct((Mp, Np), jnp.bfloat16),
            grid_spec=pltpu.PrefetchScalarGridSpec(
                num_scalar_prefetch=0,
                grid=(Mp // tm, Np // tn, nk),
                in_specs=in_specs,
                out_specs=pl.BlockSpec((tm, tn), lambda i, j, k: (i, j)),
                scratch_shapes=[pltpu.VMEM((tm, tn), jnp.float32)]),
            compiler_params=pltpu.CompilerParams(
                dimension_semantics=("parallel", "parallel", "arbitrary")),
            cost_estimate=cost,
        )(*args)

    if Mp != M or Np != cout:
        out = out[:M, :cout]
    return out


# ----------------------------------------------------------------------------
# Pallas kernel 2: direct 3x3 stride-1 conv (implicit im2col, taps accumulated
# in-kernel from a VMEM-resident padded activation) + bias + ReLU
# ----------------------------------------------------------------------------
def _make_direct3x3_kernel(oh, ow, tn, relu):
    taps = [(di, dj) for di in range(3) for dj in range(3)]

    def kernel(x_ref, w_ref, b_ref, o_ref):
        # x_ref: (1, Hp, Wp, Cin) bf16   w_ref: (9, Cin, tn) bf16   b_ref: (1, tn) f32
        cin = x_ref.shape[-1]
        acc = jnp.zeros((oh * ow, tn), jnp.float32)
        for t, (di, dj) in enumerate(taps):
            patch = x_ref[0, di:di + oh, dj:dj + ow, :].reshape(oh * ow, cin)
            acc = acc + jnp.dot(patch, w_ref[t],
                                preferred_element_type=jnp.float32)
        out = acc + b_ref[...]
        if relu:
            out = jnp.maximum(out, 0.0)
        o_ref[0] = out.astype(o_ref.dtype)

    return kernel


def conv3x3_direct(x, w_d, bias_p, cout, relu=True):
    """3x3 / stride 1 / pad 1 conv.  x: (N,H,W,Cin) bf16, w_d: (9,Cin,Coutp) bf16."""
    N, H, W, Cin = x.shape
    Coutp = w_d.shape[-1]
    OH, OW = H, W
    xp = jnp.pad(x, ((0, 0), (1, 1), (1, 1), (0, 0)))
    Hp, Wp = H + 2, W + 2
    # Cover the whole channel dim when it fits (<=512): the activation tile is then
    # DMA'd exactly once per image instead of once per Cout tile.
    if Coutp <= 512:
        tn = Coutp
    else:
        tn = _pick_tn(Coutp)

    flops = 2 * N * OH * OW * 9 * Cin * Coutp
    bytes_accessed = (xp.size * 2 * (Coutp // tn) + w_d.size * 2
                      + N * OH * OW * Coutp * 2)

    out = pl.pallas_call(
        _make_direct3x3_kernel(OH, OW, tn, relu),
        out_shape=jax.ShapeDtypeStruct((N, OH * OW, Coutp), jnp.bfloat16),
        grid_spec=pltpu.PrefetchScalarGridSpec(
            num_scalar_prefetch=0,
            grid=(N, Coutp // tn),
            in_specs=[pl.BlockSpec((1, Hp, Wp, Cin), lambda n, j: (n, 0, 0, 0)),
                      pl.BlockSpec((9, Cin, tn), lambda n, j: (0, 0, j)),
                      pl.BlockSpec((1, tn), lambda n, j: (0, j))],
            out_specs=pl.BlockSpec((1, OH * OW, tn), lambda n, j: (n, 0, j))),
        compiler_params=pltpu.CompilerParams(
            dimension_semantics=("parallel", "parallel")),
        cost_estimate=pl.CostEstimate(flops=flops, transcendentals=0,
                                      bytes_accessed=bytes_accessed),
    )(xp, w_d, bias_p)
    if Coutp != cout:
        out = out[..., :cout]
    return out.reshape(N, OH, OW, cout)


_DIRECT3X3_SUPPORTED = None


def _direct3x3_supported():
    """Probe the direct 3x3 kernel once; fall back to im2col GEMM if lowering fails."""
    global _DIRECT3X3_SUPPORTED
    if _DIRECT3X3_SUPPORTED is None:
        try:
            xz = jnp.zeros((1, 4, 4, 64), jnp.bfloat16)
            wz = jnp.zeros((9, 64, 128), jnp.bfloat16)
            bz = jnp.zeros((1, 128), jnp.float32)
            jax.block_until_ready(conv3x3_direct(xz, wz, bz, cout=64, relu=True))
            _DIRECT3X3_SUPPORTED = True
        except Exception:
            _DIRECT3X3_SUPPORTED = False
    return _DIRECT3X3_SUPPORTED


# ----------------------------------------------------------------------------
# Pallas kernel 3: max over pooling taps (lane-dense, 3 row taps only)
# ----------------------------------------------------------------------------
def _max_taps_kernel(x_ref, o_ref):
    o_ref[...] = jnp.max(x_ref[...], axis=0)


def maxpool_rows(stacked):
    # stacked: (T, R, L) -> (R, L) elementwise max over taps; L is lane-dense (128).
    T, R, L = stacked.shape
    if R <= 1024:
        Rp = _round_up(R, 8)
        tm = Rp
    else:
        Rp = _round_up(R, 512)
        tm = 512
    if Rp != R:
        stacked = jnp.pad(stacked, ((0, 0), (0, Rp - R), (0, 0)),
                          constant_values=-jnp.inf)
    out = pl.pallas_call(
        _max_taps_kernel,
        out_shape=jax.ShapeDtypeStruct((Rp, L), stacked.dtype),
        grid_spec=pltpu.PrefetchScalarGridSpec(
            num_scalar_prefetch=0,
            grid=(Rp // tm,),
            in_specs=[pl.BlockSpec((T, tm, L), lambda i: (0, i, 0))],
            out_specs=pl.BlockSpec((tm, L), lambda i: (i, 0))),
        compiler_params=pltpu.CompilerParams(dimension_semantics=("parallel",)),
    )(stacked)
    return out[:R]


def maxpool3x3s2(x):
    N, H, W, C = x.shape
    OH = (H + 2 - 3) // 2 + 1
    OW = (W + 2 - 3) // 2 + 1
    xp = jnp.pad(x, ((0, 0), (1, 1), (1, 1), (0, 0)), constant_values=-jnp.inf)
    # Column (W) taps folded with cheap fused elementwise max (no 9x stack in HBM).
    cm = xp[:, :, 0:2 * OW:2, :]
    for dj in (1, 2):
        cm = jnp.maximum(cm, xp[:, :, dj:dj + 2 * OW:2, :])
    # Remaining 3 row taps reduced in the Pallas kernel with a lane-dense layout.
    rows = jnp.stack([cm[:, di:di + 2 * OH:2, :, :] for di in range(3)], axis=0)
    M = N * OH * OW
    if (M * C) % 128 == 0:
        stacked = rows.reshape(3, (M * C) // 128, 128)
    else:
        stacked = rows.reshape(3, M, C)
    out = maxpool_rows(stacked)
    return out.reshape(N, OH, OW, C)


# ----------------------------------------------------------------------------
# Explicit im2col (only for the 7x7 stem and the 3 stride-2 3x3 convs)
# ----------------------------------------------------------------------------
def im2col(x, kh, kw, stride, pad):
    N, H, W, C = x.shape
    OH = (H + 2 * pad - kh) // stride + 1
    OW = (W + 2 * pad - kw) // stride + 1
    if pad > 0:
        x = jnp.pad(x, ((0, 0), (pad, pad), (pad, pad), (0, 0)))
    cols = []
    for i in range(kh):
        for j in range(kw):
            cols.append(x[:, i:i + stride * OH:stride, j:j + stride * OW:stride, :])
    patches = jnp.stack(cols, axis=3)                     # (N, OH, OW, kh*kw, C)
    return patches.reshape(N * OH * OW, kh * kw * C), (N, OH, OW)


# ----------------------------------------------------------------------------
# Deterministic ResNet-50 parameter construction (BN folded into conv, f32)
# ----------------------------------------------------------------------------
def make_conv_bn(key, kh, kw, cin, cout):
    k1, k2, k3, k4, k5 = jax.random.split(key, 5)
    w = jax.random.normal(k1, (kh, kw, cin, cout), jnp.float32) * np.sqrt(
        2.0 / (kh * kw * cin))
    gamma = 1.0 + 0.1 * jax.random.normal(k2, (cout,), jnp.float32)
    beta = 0.1 * jax.random.normal(k3, (cout,), jnp.float32)
    mean = 0.1 * jax.random.normal(k4, (cout,), jnp.float32)
    var = jnp.abs(1.0 + 0.1 * jax.random.normal(k5, (cout,), jnp.float32))
    eps = 1e-5
    scale = gamma / jnp.sqrt(var + eps)
    return (w * scale, beta - mean * scale)


def make_layer(key, inplanes, planes, blocks, stride):
    keys = jax.random.split(key, blocks * 4)
    layer = []
    for b in range(blocks):
        s = stride if b == 0 else 1
        inp = inplanes if b == 0 else planes * 4
        blk = {
            "conv1": make_conv_bn(keys[b * 4 + 0], 1, 1, inp, planes),
            "conv2": make_conv_bn(keys[b * 4 + 1], 3, 3, planes, planes),
            "conv3": make_conv_bn(keys[b * 4 + 2], 1, 1, planes, planes * 4),
            "stride": s,
        }
        if b == 0:  # downsample path (1x1 conv + BN)
            blk["down"] = make_conv_bn(keys[b * 4 + 3], 1, 1, inp, planes * 4)
        layer.append(blk)
    return layer


def init_resnet50_params(key):
    k0, k1, k2, k3, k4 = jax.random.split(key, 5)
    return {
        "conv1": make_conv_bn(k0, 7, 7, 3, 64),
        "layer1": make_layer(k1, 64, 64, 3, 1),
        "layer2": make_layer(k2, 256, 128, 4, 2),
        "layer3": make_layer(k3, 512, 256, 6, 2),
        "layer4": make_layer(k4, 1024, 512, 3, 2),
    }


# ----------------------------------------------------------------------------
# One-time weight preparation: reshape, zero-pad to 128 multiples, cast to bf16.
# Returns (static_meta, arrays) so the arrays can be passed as jit arguments
# while the metadata (strings/ints) is closed over.
# ----------------------------------------------------------------------------
def _prep_conv(wb, stride, use_direct):
    W, b = wb
    kh, kw, cin, cout = W.shape
    coutp = _round_up(cout, 128)
    bias_p = jnp.zeros((1, coutp), jnp.float32).at[0, :cout].set(b)
    if kh == 3 and kw == 3 and stride == 1 and use_direct:
        wd = jnp.zeros((9, cin, coutp), jnp.float32)
        wd = wd.at[:, :, :cout].set(W.reshape(9, cin, cout))
        meta = {"kind": "direct", "cout": cout}
        arrs = {"w": wd.astype(jnp.bfloat16), "b": bias_p}
        return meta, arrs
    K = kh * kw * cin
    Kp = _round_up(K, 128)
    wm = jnp.zeros((Kp, coutp), jnp.float32)
    wm = wm.at[:K, :cout].set(W.reshape(K, cout))
    meta = {"kind": "gemm", "kh": kh, "kw": kw, "stride": stride, "cout": cout}
    arrs = {"w": wm.astype(jnp.bfloat16), "b": bias_p}
    return meta, arrs


def prepare_params(params):
    use_direct = _direct3x3_supported()
    meta, arrs = {}, {}
    meta["conv1"], arrs["conv1"] = _prep_conv(params["conv1"], 2, use_direct)
    for name in ("layer1", "layer2", "layer3", "layer4"):
        mlist, alist = [], []
        for blk in params[name]:
            mblk, ablk = {}, {}
            mblk["conv1"], ablk["conv1"] = _prep_conv(blk["conv1"], 1, use_direct)
            mblk["conv2"], ablk["conv2"] = _prep_conv(blk["conv2"], blk["stride"],
                                                      use_direct)
            mblk["conv3"], ablk["conv3"] = _prep_conv(blk["conv3"], 1, use_direct)
            if "down" in blk:
                mblk["down"], ablk["down"] = _prep_conv(blk["down"], blk["stride"],
                                                        use_direct)
            mlist.append(mblk)
            alist.append(ablk)
        meta[name], arrs[name] = mlist, alist
    return meta, arrs


# ----------------------------------------------------------------------------
# Forward (mirrors ResNetConv.forward exactly)
# ----------------------------------------------------------------------------
def apply_conv(x, meta, arr, relu=True, residual=None):
    if meta["kind"] == "direct":
        # residual fusion is only ever needed on the 1x1 conv3 (gemm) path
        return conv3x3_direct(x, arr["w"], arr["b"], meta["cout"], relu=relu)
    kh, kw, stride, cout = meta["kh"], meta["kw"], meta["stride"], meta["cout"]
    pad = (kh - 1) // 2
    if kh == 1 and kw == 1:
        xs = x[:, ::stride, ::stride, :] if stride > 1 else x
        N, OH, OW, Cin = xs.shape
        A = xs.reshape(N * OH * OW, Cin)
    else:
        A, (N, OH, OW) = im2col(x, kh, kw, stride, pad)
    res2d = (residual.reshape(-1, residual.shape[-1])
             if residual is not None else None)
    out = gemm_bias_act(A, arr["w"], arr["b"], cout, residual=res2d, relu=relu)
    return out.reshape(N, OH, OW, cout)


def bottleneck(x, mblk, ablk):
    identity = x
    out = apply_conv(x, mblk["conv1"], ablk["conv1"], relu=True)
    out = apply_conv(out, mblk["conv2"], ablk["conv2"], relu=True)
    if "down" in mblk:
        identity = apply_conv(x, mblk["down"], ablk["down"], relu=False)
    # conv3 + BN + residual add + ReLU fused in one Pallas GEMM kernel
    out = apply_conv(out, mblk["conv3"], ablk["conv3"], relu=True,
                     residual=identity)
    return out


def run_layer(x, mlayer, alayer):
    for mblk, ablk in zip(mlayer, alayer):
        x = bottleneck(x, mblk, ablk)
    return x


def resnet_conv_forward(x_nchw, arrs, meta, n_blocks=4):
    x = jnp.transpose(x_nchw, (0, 2, 3, 1)).astype(jnp.bfloat16)  # NCHW -> NHWC bf16
    x = apply_conv(x, meta["conv1"], arrs["conv1"], relu=True)    # conv1+bn1+relu
    x = maxpool3x3s2(x)                                           # maxpool
    y = None
    if n_blocks >= 1:
        y = run_layer(x, meta["layer1"], arrs["layer1"])
    if n_blocks >= 2:
        x = run_layer(y, meta["layer2"], arrs["layer2"])
    if n_blocks >= 3:
        x = run_layer(x, meta["layer3"], arrs["layer3"])
    if n_blocks >= 4:
        x = run_layer(x, meta["layer4"], arrs["layer4"])
    x_out = jnp.transpose(x, (0, 3, 1, 2)).astype(jnp.float32)    # back to NCHW
    y_out = (jnp.transpose(y, (0, 3, 1, 2)).astype(jnp.float32)
             if y is not None else None)
    return x_out, y_out


def make_resnet_forward(meta, n_blocks=4):
    """Single jitted executable for the whole forward (params passed as args)."""
    def fwd(x_nchw, arrs):
        return resnet_conv_forward(x_nchw, arrs, meta, n_blocks=n_blocks)
    return jax.jit(fwd)


# ----------------------------------------------------------------------------
if __name__ == "__main__":
    key = jax.random.PRNGKey(0)
    kx, kp, kc = jax.random.split(key, 3)

    # ---- self-check 1: GEMM (+bias +residual +ReLU) kernel vs reference ----
    k1, k2, k3, k4 = jax.random.split(kc, 4)
    a = jax.random.normal(k1, (72, 200), jnp.float32)
    w = jax.random.normal(k2, (200, 160), jnp.float32) * 0.05
    b = jax.random.normal(k3, (160,), jnp.float32) * 0.1
    r = jax.random.normal(k4, (72, 160), jnp.float32)
    wp = jnp.zeros((256, 256), jnp.float32).at[:200, :160].set(w).astype(jnp.bfloat16)
    bp = jnp.zeros((1, 256), jnp.float32).at[0, :160].set(b)
    out = gemm_bias_act(a.astype(jnp.bfloat16), wp, bp, cout=160,
                        residual=r.astype(jnp.bfloat16), relu=True)
    a16 = a.astype(jnp.bfloat16).astype(jnp.float32)
    w16 = wp[:200, :160].astype(jnp.float32)
    r16 = r.astype(jnp.bfloat16).astype(jnp.float32)
    ref = jnp.maximum(
        jnp.dot(a16, w16, precision=jax.lax.Precision.HIGHEST) + b + r16, 0.0)
    np.testing.assert_allclose(np.asarray(out, np.float32), np.asarray(ref),
                               rtol=5e-2, atol=5e-2)

    # ---- self-check 2: 3x3 stride-1 conv (direct kernel or its GEMM fallback) ----
    kcx, kcw, kcb = jax.random.split(k1, 3)
    xc = jax.random.normal(kcx, (2, 8, 8, 64), jnp.float32)
    Wc = jax.random.normal(kcw, (3, 3, 64, 64), jnp.float32) * 0.06
    bc = jax.random.normal(kcb, (64,), jnp.float32) * 0.1
    pcm, pca = _prep_conv((Wc, bc), stride=1, use_direct=_direct3x3_supported())
    outc = apply_conv(xc.astype(jnp.bfloat16), pcm, pca, relu=True)
    x16 = xc.astype(jnp.bfloat16).astype(jnp.float32)
    W16 = Wc.astype(jnp.bfloat16).astype(jnp.float32)
    refc = jax.lax.conv_general_dilated(
        x16, W16, window_strides=(1, 1), padding="SAME",
        dimension_numbers=("NHWC", "HWIO", "NHWC"),
        precision=jax.lax.Precision.HIGHEST,
        preferred_element_type=jnp.float32)
    refc = jnp.maximum(refc + bc, 0.0)
    np.testing.assert_allclose(np.asarray(outc, np.float32), np.asarray(refc),
                               rtol=5e-2, atol=1e-1)

    # ---- full ResNetConv forward (small NCHW input), single jitted executable ----
    x = jax.random.normal(kx, (2, 3, 32, 32), jnp.float32)
    params = init_resnet50_params(kp)
    meta, arrs = prepare_params(params)
    fwd = make_resnet_forward(meta, n_blocks=4)

    x_out, y_out = fwd(x, arrs)
    x_out = jax.block_until_ready(x_out)
    y_out = jax.block_until_ready(y_out)

    assert x_out.shape == (2, 2048, 1, 1), x_out.shape   # layer4 output
    assert y_out.shape == (2, 256, 8, 8), y_out.shape    # layer1 output
    assert bool(jnp.all(jnp.isfinite(x_out))) and bool(jnp.all(jnp.isfinite(y_out)))
    print("KERNEL_OK")
</pallas_src>

<mosaic_0001>
module attributes {stable_mosaic.version = 11 : i64} {
  func.func @kernel(%arg0: i32, %arg1: i32, %arg2: memref<80x256xbf16, #tpu.memory_space<vmem>>, %arg3: memref<256x256xbf16, #tpu.memory_space<vmem>>, %arg4: memref<1x256xf32, #tpu.memory_space<vmem>>, %arg5: memref<80x256xbf16, #tpu.memory_space<vmem>>, %arg6: memref<80x256xbf16, #tpu.memory_space<vmem>>) attributes {dimension_semantics = [#tpu.dimension_semantics<parallel>, #tpu.dimension_semantics<parallel>], iteration_bounds = array<i64: 1, 1>, scalar_prefetch = 0 : i64, scratch_operands = 0 : i64, tpu.core_type = #tpu.core_type<tc>, window_params = [{transform_indices = @transform_0, window_bounds = array<i64: 80, 256>}, {transform_indices = @transform_1, window_bounds = array<i64: 256, 256>}, {transform_indices = @transform_2, window_bounds = array<i64: 1, 256>}, {transform_indices = @transform_3, window_bounds = array<i64: 80, 256>}, {transform_indices = @transform_4, window_bounds = array<i64: 80, 256>}]} {
    %c0 = arith.constant 0 : index
    %c0_0 = arith.constant 0 : index
    %0 = vector.load %arg2[%c0, %c0_0] : memref<80x256xbf16, #tpu.memory_space<vmem>>, vector<80x256xbf16>
    %c0_1 = arith.constant 0 : index
    %c0_2 = arith.constant 0 : index
    %1 = vector.load %arg3[%c0_1, %c0_2] : memref<256x256xbf16, #tpu.memory_space<vmem>>, vector<256x256xbf16>
    %cst = arith.constant dense<0.000000e+00> : vector<80x256xf32>
    %2 = tpu.matmul %0, %1, %cst {dimension_numbers = #tpu.dot_dimension_numbers<[1], [0], [0], [1], [0, 0, 1, 1], [], []>} : vector<80x256xbf16>, vector<256x256xbf16>, vector<80x256xf32> -> vector<80x256xf32>
    %c0_3 = arith.constant 0 : index
    %c0_4 = arith.constant 0 : index
    %3 = vector.load %arg4[%c0_3, %c0_4] : memref<1x256xf32, #tpu.memory_space<vmem>>, vector<1x256xf32>
    %4 = vector.broadcast %3 : vector<1x256xf32> to vector<80x256xf32>
    %5 = arith.addf %2, %4 : vector<80x256xf32>
    %c0_5 = arith.constant 0 : index
    %c0_6 = arith.constant 0 : index
    %6 = vector.load %arg5[%c0_5, %c0_6] : memref<80x256xbf16, #tpu.memory_space<vmem>>, vector<80x256xbf16>
    %7 = arith.extf %6 : vector<80x256xbf16> to vector<80x256xf32>
    %8 = arith.addf %5, %7 : vector<80x256xf32>
    %cst_7 = arith.constant 0.000000e+00 : f32
    %9 = vector.broadcast %cst_7 : f32 to vector<80x256xf32>
    %10 = arith.maximumf %8, %9 : vector<80x256xf32>
    %11 = arith.truncf %10 : vector<80x256xf32> to vector<80x256xbf16>
    %c0_8 = arith.constant 0 : index
    %c0_9 = arith.constant 0 : index
    %12 = vector.load %arg6[%c0_8, %c0_9] : memref<80x256xbf16, #tpu.memory_space<vmem>>, vector<80x256xbf16>
    tpu.vector_store %arg6[%c0_8, %c0_9], %11 {strides = array<i32>} : memref<80x256xbf16, #tpu.memory_space<vmem>>, vector<80x256xbf16>,
    return
  }
  func.func @transform_0(%arg0: i32, %arg1: i32) -> (i32, i32) {
    %c0_i32 = arith.constant 0 : i32
    %c0_i32_0 = arith.constant 0 : i32
    return %arg0, %c0_i32 : i32, i32
  }
  func.func @transform_1(%arg0: i32, %arg1: i32) -> (i32, i32) {
    %c0_i32 = arith.constant 0 : i32
    %c0_i32_0 = arith.constant 0 : i32
    return %c0_i32, %arg1 : i32, i32
  }
  func.func @transform_2(%arg0: i32, %arg1: i32) -> (i32, i32) {
    %c0_i32 = arith.constant 0 : i32
    %c0_i32_0 = arith.constant 0 : i32
    return %c0_i32, %arg1 : i32, i32
  }
  func.func @transform_3(%arg0: i32, %arg1: i32) -> (i32, i32) {
    %c0_i32 = arith.constant 0 : i32
    return %arg0, %arg1 : i32, i32
  }
  func.func @transform_4(%arg0: i32, %arg1: i32) -> (i32, i32) {
    %c0_i32 = arith.constant 0 : i32
    return %arg0, %arg1 : i32, i32
  }
}

</mosaic_0001>

<bundles_post_ra>
// kernel: tpu_custom_call.1
= control target key start
LH: loop header
LB: loop body
LE: loop exit
PB: predicated region body
PF: predicated region fallthrough
CT: control target
= control target key end

     0   :  { %9 = vsyncpa [#allocation3], 0  ;;  %s956_s0 = inlined_call_operand.hbm [shape: bf16[80,256], index: 0, kind: input, shape index: {}]   ;;  %s957_s1 = inlined_call_operand.hbm [shape: bf16[256,256], index: 1, kind: input, shape index: {}]   ;;  %s958_s2 = inlined_call_operand.vmem [shape: f32[1,256], index: 2, kind: input, shape index: {}]   ;;  %s959_s3 = inlined_call_operand.hbm [shape: bf16[80,256], index: 3, kind: input, shape index: {}]   ;;  %s960_s4 = inlined_call_operand.hbm [shape: bf16[80,256], index: 4, kind: output, shape index: {}]  }
   0x1   :  { %10 = vsyncpa [#allocation6], 0 }
   0x2   :  { %11 = vsyncpa [#allocation4], 0  ;;  %s821_s15 = smov [#allocation5]   ;;  %s822_s17 = smov [#allocation2]  }
   0x3   :  { %s29_s16 = sshll.u32 %s821_s15, 4  ;;  %s17_s18 = sshll.u32 %s822_s17, 4  ;;  %s30_s16 = int_to_ptr.vmem [resolvable:$true] %s29_s16  ;;  %s852_s18 = int_to_ptr.vmem [resolvable:$true] %s17_s18 }
   0x4   :  { %s727_s21 = scalar_lea.hbm %s957_s1, 4096 }
   0x5   :  { %p728_p0 = scmp.ne.s32.totalorder %s957_s1, %s727_s21  ;;  %p731_p1 = scmp.lt.u32.totalorder %s727_s21, %s957_s1 }
   0x7   :  { %p733_p2 = pnand %p731_p1, %p728_p0 }
   0x9   :  { %736 = shalt.err (!%p733_p2)
}
   0xa   :  { %s737_s26 = scalar_lea.vmem %s30_s16, 4096  ;;  %p742_p4 = scmp.lt.s32.totalorder %s30_s16, %s30_s16 }
   0xb   :  { %p738_p3 = scmp.ne.s32.totalorder %s30_s16, %s737_s26  ;;  %p743_p5 = scmp.lt.s32.totalorder %s737_s26, %s737_s26 }
   0xd   :  { %p744_p6 = por %p743_p5, %p742_p4 }
   0xf   :  { %p745_p7 = pnand %p744_p6, %p738_p3 }
  0x11   :  { %748 = shalt.err (!%p745_p7)
}
  0x12   :  { %s823_s27 = smov 128   ;;  %s824_s28 = smov 8  }
  0x13   :  { %35 = dma.hbm_to_vmem [thread:$0]  %s957_s1, 4096, %s30_s16, [#allocation6], %s823_s27, %s823_s27, %s824_s28  }
  0x14   :  { %s749_s7 = scalar_lea.hbm %s956_s0, 1280 }
  0x15   :  { %p750_p8 = scmp.ne.s32.totalorder %s956_s0, %s749_s7  ;;  %p753_p9 = scmp.lt.u32.totalorder %s749_s7, %s956_s0 }
  0x17   :  { %p755_p10 = pnand %p753_p9, %p750_p8 }
  0x19   :  { %758 = shalt.err (!%p755_p10)
}
  0x1a   :  { %s759_s12 = scalar_lea.vmem %s852_s18, 1280  ;;  %p764_p12 = scmp.lt.s32.totalorder %s852_s18, %s852_s18 }
  0x1b   :  { %p760_p11 = scmp.ne.s32.totalorder %s852_s18, %s759_s12  ;;  %p765_p13 = scmp.lt.s32.totalorder %s759_s12, %s759_s12 }
  0x1d   :  { %p766_p0 = por %p765_p13, %p764_p12 }
  0x1f   :  { %p767_p1 = pnand %p766_p0, %p760_p11 }
  0x21   :  { %770 = shalt.err (!%p767_p1)
}
  0x22   :  { %23 = dma.hbm_to_vmem [thread:$0]  %s956_s0, 1280, %s852_s18, [#allocation3], %s823_s27, %s823_s27, %s824_s28  }
  0x23   :  { %s825_s14 = smov [#allocation7]   ;;  %s771_s19 = scalar_lea.hbm %s959_s3, 1280 }
  0x24   :  { %s43_s15 = sshll.u32 %s825_s14, 4  ;;  %p772_p2 = scmp.ne.s32.totalorder %s959_s3, %s771_s19  ;;  %s44_s15 = int_to_ptr.vmem [resolvable:$true] %s43_s15 }
  0x25   :  { %p775_p3 = scmp.lt.u32.totalorder %s771_s19, %s959_s3 }
  0x27   :  { %p777_p4 = pnand %p775_p3, %p772_p2 }
  0x29   :  { %780 = shalt.err (!%p777_p4)
}
  0x2a   :  { %s781_s24 = scalar_lea.vmem %s44_s15, 1280  ;;  %p786_p6 = scmp.lt.s32.totalorder %s44_s15, %s44_s15 }
  0x2b   :  { %p782_p5 = scmp.ne.s32.totalorder %s44_s15, %s781_s24  ;;  %p787_p7 = scmp.lt.s32.totalorder %s781_s24, %s781_s24 }
  0x2d   :  { %p788_p8 = por %p787_p7, %p786_p6 }
  0x2f   :  { %p789_p9 = pnand %p788_p8, %p782_p5 }
  0x31   :  { %792 = shalt.err (!%p789_p9)
}
  0x32   :  { %49 = dma.hbm_to_vmem [thread:$0]  %s959_s3, 1280, %s44_s15, [#allocation6], %s823_s27, %s823_s27, %s824_s28  }
  0x33   :  { %815 = dma.done.wait [#allocation3], 1280  }
  0x34   :  { %816 = vsyncadd [#allocation3], 4294966016 }
  0x35   :  { %817 = dma.done.wait [#allocation6], 5376  }
  0x36   :  { %818 = vsyncadd [#allocation6], 4294961920  ;;  %v664_v0 = vld [vmem:[#allocation5 + $0x4] ss:$8 sps:$4 sm:$0xff]   ;;  %v666_v1 = vld [vmem:[#allocation5] ss:$8 sps:$4 sm:$0xff]   ;;  %v103_v42 = vlaneseq }
  0x37   :  { %323 = vmatprep.subr.bf16.mxu0 %v664_v0  ;;  %v667_v2 = vld [vmem:[#allocation5 + $0x14] ss:$8 sps:$4 sm:$0xff]   ;;  %626 = vmatprep.subr.bf16.mxu1 %v664_v0  ;;  %v669_v3 = vld [vmem:[#allocation5 + $0x10] ss:$8 sps:$4 sm:$0xff]   ;;  %v670_v4 = vld [vmem:[#allocation5 + $0x24] ss:$8 sps:$4 sm:$0xff]  }
  0x38   :  { %324 = vmatpush1.bf16.msra.mxu0 %v666_v1  ;;  %642 = vmatpush1.bf16.msra.mxu1 %v666_v1  ;;  %v672_v5 = vld [vmem:[#allocation5 + $0x20] ss:$8 sps:$4 sm:$0xff]   ;;  %v673_v6 = vld [vmem:[#allocation5 + $0x34] ss:$8 sps:$4 sm:$0xff]   ;;  %v675_v7 = vld [vmem:[#allocation5 + $0x30] ss:$8 sps:$4 sm:$0xff]  }
  0x39   :  { %325 = vmatprep.subr.bf16.mxu0 %v667_v2  ;;  %627 = vmatprep.subr.bf16.mxu1 %v667_v2  ;;  %v676_v8 = vld [vmem:[#allocation5 + $0x44] ss:$8 sps:$4 sm:$0xff]   ;;  %v678_v9 = vld [vmem:[#allocation5 + $0x40] ss:$8 sps:$4 sm:$0xff]   ;;  %v679_v10 = vld [vmem:[#allocation5 + $0x54] ss:$8 sps:$4 sm:$0xff]  }
  0x3a   :  { %v681_v11 = vld [vmem:[#allocation5 + $0x50] ss:$8 sps:$4 sm:$0xff]   ;;  %v682_v12 = vld [vmem:[#allocation5 + $0x64] ss:$8 sps:$4 sm:$0xff]   ;;  %v714_v13 = vld [vmem:[#allocation2 + $0x4] ss:$8 sps:$4 sm:$0xff]  }
  0x3b   :  { %v684_v14 = vld [vmem:[#allocation5 + $0x60] ss:$8 sps:$4 sm:$0xff]   ;;  %v717_v15 = vld [vmem:[#allocation2 + $0x34] ss:$8 sps:$4 sm:$0xff]   ;;  %v685_v16 = vld [vmem:[#allocation5 + $0x74] ss:$8 sps:$4 sm:$0xff]   ;;  %355 = vmatprep.mubr.bf16.mxu0 %v714_v13 }
  0x3c   :  { %326 = vmatpush1.bf16.msra.mxu0 %v669_v3  ;;  %643 = vmatpush1.bf16.msra.mxu1 %v669_v3  ;;  %v687_v17 = vld [vmem:[#allocation5 + $0x70] ss:$8 sps:$4 sm:$0xff]   ;;  %v688_v18 = vld [vmem:[#allocation5 + $0x84] ss:$8 sps:$4 sm:$0xff]   ;;  %v690_v19 = vld [vmem:[#allocation5 + $0x80] ss:$8 sps:$4 sm:$0xff]  }
  0x3d   :  { %327 = vmatprep.subr.bf16.mxu0 %v670_v4  ;;  %628 = vmatprep.subr.bf16.mxu1 %v670_v4  ;;  %v691_v20 = vld [vmem:[#allocation5 + $0x94] ss:$8 sps:$4 sm:$0xff]   ;;  %v693_v21 = vld [vmem:[#allocation5 + $0x90] ss:$8 sps:$4 sm:$0xff]   ;;  %v694_v22 = vld [vmem:[#allocation5 + $0xa4] ss:$8 sps:$4 sm:$0xff]  }
  0x3e   :  { %385 = vmatprep.mubr.bf16.mxu1 %v717_v15  ;;  %v696_v23 = vld [vmem:[#allocation5 + $0xa0] ss:$8 sps:$4 sm:$0xff]   ;;  %v697_v24 = vld [vmem:[#allocation5 + $0xb4] ss:$8 sps:$4 sm:$0xff]   ;;  %v699_v25 = vld [vmem:[#allocation5 + $0xb0] ss:$8 sps:$4 sm:$0xff]  }
  0x3f   :  { %v700_v26 = vld [vmem:[#allocation5 + $0xc4] ss:$8 sps:$4 sm:$0xff]   ;;  %v702_v27 = vld [vmem:[#allocation5 + $0xc0] ss:$8 sps:$4 sm:$0xff]   ;;  %v703_v28 = vld [vmem:[#allocation5 + $0xd4] ss:$8 sps:$4 sm:$0xff]  }
  0x40   :  { %328 = vmatpush1.bf16.msra.mxu0 %v672_v5  ;;  %644 = vmatpush1.bf16.msra.mxu1 %v672_v5  ;;  %v705_v29 = vld [vmem:[#allocation5 + $0xd0] ss:$8 sps:$4 sm:$0xff]   ;;  %v706_v30 = vld [vmem:[#allocation5 + $0xe4] ss:$8 sps:$4 sm:$0xff]   ;;  %v708_v31 = vld [vmem:[#allocation5 + $0xe0] ss:$8 sps:$4 sm:$0xff]  }
  0x41   :  { %329 = vmatprep.subr.bf16.mxu0 %v673_v6  ;;  %629 = vmatprep.subr.bf16.mxu1 %v673_v6  ;;  %v709_v32 = vld [vmem:[#allocation5 + $0xf4] ss:$8 sps:$4 sm:$0xff]   ;;  %v711_v33 = vld [vmem:[#allocation5 + $0xf0] ss:$8 sps:$4 sm:$0xff]   ;;  %v715_v35 = vld [vmem:[#allocation2 + $0x30] ss:$8 sps:$4 sm:$0xff]  }
  0x42   :  { %v712_v34 = vld [vmem:[#allocation2] ss:$8 sps:$4 sm:$0xff]   ;;  %v718_v36 = vld [vmem:[#allocation2 + $0x14] ss:$8 sps:$4 sm:$0xff]   ;;  %v721_v37 = vld [vmem:[#allocation2 + $0x44] ss:$8 sps:$4 sm:$0xff]  }
  0x43   :  { %v720_v38 = vld [vmem:[#allocation2 + $0x10] ss:$8 sps:$4 sm:$0xff]   ;;  %v723_v39 = vld [vmem:[#allocation2 + $0x40] ss:$8 sps:$4 sm:$0xff]   ;;  %v724_v40 = vld [vmem:[#allocation2 + $0x24] ss:$8 sps:$4 sm:$0xff]  }
  0x44   :  { %330 = vmatpush1.bf16.msra.mxu0 %v675_v7  ;;  %645 = vmatpush1.bf16.msra.mxu1 %v675_v7  ;;  %v726_v41 = vld [vmem:[#allocation2 + $0x20] ss:$8 sps:$4 sm:$0xff]   ;;  %v104_v43 = vshrl.u32 %v103_v42, 7  ;;  %v406_v47 = vld [vmem:[#allocation7] sm:$0xff]  ;;  %v407_v48 = vld [vmem:[#allocation7 + $0x8] sm:$0xff] }
  0x45   :  { %331 = vmatprep.subr.bf16.mxu0 %v676_v8  ;;  %630 = vmatprep.subr.bf16.mxu1 %v676_v8  ;;  %v101_v45 = vld [vmem:[%s958_s2] sm:$0x3]  ;;  %v413_v51 = vld [vmem:[#allocation7 + $0x38] sm:$0xff]  ;;  %v416_v54 = vunpack.c.l.bf16 %v406_v47  ;;  %v417_v55 = vunpack.c.h.bf16 %v406_v47  ;;  %v418_v56 = vunpack.c.l.bf16 %v407_v48  ;;  %v419_v60 = vunpack.c.h.bf16 %v407_v48  ;;  %s826_s2 = smov [#allocation8]  }
  0x46   :  { %v105_v44 = vsub.s32 0, %v104_v43  ;;  %v109_v46 = vsub.s32 1, %v104_v43  ;;  %v412_v49 = vld [vmem:[#allocation7 + $0x30] sm:$0xff]  ;;  %v913_v58 = vld [vmem:[#allocation7 + $0x18] sm:$0xff]  ;;  %v430_v63 = vunpack.c.l.bf16 %v413_v51  ;;  %v431_v5 = vunpack.c.h.bf16 %v413_v51  ;;  %s551_s26 = sshll.u32 %s826_s2, 4  ;;  %s552_s26 = int_to_ptr.vmem [resolvable:$true] %s551_s26 }
  0x47   :  { %v909_v52 = vld [vmem:[#allocation7 + $0x10] sm:$0xff]  ;;  %v428_v57 = vunpack.c.l.bf16 %v412_v49  ;;  %v429_v62 = vunpack.c.h.bf16 %v412_v49  ;;  %s793_s29 = scalar_lea.vmem %s552_s26, 1280  ;;  %p798_p11 = scmp.lt.s32.totalorder %s552_s26, %s552_s26 }
  0x48   :  { %332 = vmatpush1.bf16.msra.mxu0 %v678_v9  ;;  %646 = vmatpush1.bf16.msra.mxu1 %v678_v9  ;;  %v907_v50 = vrot.slane %v101_v45, %v105_v44  ;;  %v911_v53 = vrot.slane %v101_v45, %v109_v46  ;;  %v420_v0 = vunpack.c.l.bf16 %v909_v52  ;;  %v421_v6 = vunpack.c.h.bf16 %v909_v52  ;;  %p794_p10 = scmp.ne.s32.totalorder %s552_s26, %s793_s29  ;;  %p799_p12 = scmp.lt.s32.totalorder %s793_s29, %s793_s29 }
  0x49   :  { %333 = vmatprep.subr.bf16.mxu0 %v679_v10  ;;  %631 = vmatprep.subr.bf16.mxu1 %v679_v10 }
  0x4a   :  { %p800_p13 = por %p799_p12, %p798_p11 }
  0x4c   :  { %334 = vmatpush1.bf16.msra.mxu0 %v681_v11  ;;  %647 = vmatpush1.bf16.msra.mxu1 %v681_v11  ;;  %v422_v11 = vunpack.c.l.bf16 %v913_v58  ;;  %p801_p0 = pnand %p800_p13, %p794_p10 }
  0x4d   :  { %335 = vmatprep.subr.bf16.mxu0 %v682_v12  ;;  %632 = vmatprep.subr.bf16.mxu1 %v682_v12  ;;  %v423_v12 = vunpack.c.h.bf16 %v913_v58 }
  0x50   :  { %336 = vmatpush1.bf16.msra.mxu0 %v684_v14  ;;  %648 = vmatpush1.bf16.msra.mxu1 %v684_v14 }
  0x51   :  { %337 = vmatprep.subr.bf16.mxu0 %v685_v16  ;;  %633 = vmatprep.subr.bf16.mxu1 %v685_v16 }
  0x54   :  { %338 = vmatpush1.bf16.msra.mxu0 %v687_v17  ;;  %649 = vmatpush1.bf16.msra.mxu1 %v687_v17 }
  0x55   :  { %339 = vmatprep.subr.bf16.mxu0 %v688_v18  ;;  %634 = vmatprep.subr.bf16.mxu1 %v688_v18 }
  0x58   :  { %340 = vmatpush1.bf16.msra.mxu0 %v690_v19  ;;  %650 = vmatpush1.bf16.msra.mxu1 %v690_v19 }
  0x59   :  { %341 = vmatprep.subr.bf16.mxu0 %v691_v20  ;;  %635 = vmatprep.subr.bf16.mxu1 %v691_v20 }
  0x5c   :  { %342 = vmatpush1.bf16.msra.mxu0 %v693_v21  ;;  %651 = vmatpush1.bf16.msra.mxu1 %v693_v21 }
  0x5d   :  { %343 = vmatprep.subr.bf16.mxu0 %v694_v22  ;;  %636 = vmatprep.subr.bf16.mxu1 %v694_v22 }
  0x60   :  { %344 = vmatpush1.bf16.msra.mxu0 %v696_v23  ;;  %652 = vmatpush1.bf16.msra.mxu1 %v696_v23  ;;  %v414_v23 = vld [vmem:[#allocation7 + $0x40] sm:$0xff] }
  0x61   :  { %345 = vmatprep.subr.bf16.mxu0 %v697_v24  ;;  %637 = vmatprep.subr.bf16.mxu1 %v697_v24 }
  0x64   :  { %346 = vmatpush1.bf16.msra.mxu0 %v699_v25  ;;  %653 = vmatpush1.bf16.msra.mxu1 %v699_v25 }
  0x65   :  { %347 = vmatprep.subr.bf16.mxu0 %v700_v26  ;;  %638 = vmatprep.subr.bf16.mxu1 %v700_v26 }
  0x68   :  { %348 = vmatpush1.bf16.msra.mxu0 %v702_v27  ;;  %654 = vmatpush1.bf16.msra.mxu1 %v702_v27 }
  0x69   :  { %349 = vmatprep.subr.bf16.mxu0 %v703_v28  ;;  %639 = vmatprep.subr.bf16.mxu1 %v703_v28 }
  0x6c   :  { %350 = vmatpush1.bf16.msra.mxu0 %v705_v29  ;;  %655 = vmatpush1.bf16.msra.mxu1 %v705_v29 }
  0x6d   :  { %351 = vmatprep.subr.bf16.mxu0 %v706_v30  ;;  %640 = vmatprep.subr.bf16.mxu1 %v706_v30 }
  0x70   :  { %352 = vmatpush1.bf16.msra.mxu0 %v708_v31  ;;  %656 = vmatpush1.bf16.msra.mxu1 %v708_v31 }
  0x71   :  { %353 = vmatprep.subr.bf16.mxu0 %v709_v32  ;;  %641 = vmatprep.subr.bf16.mxu1 %v709_v32  ;;  %v415_v32 = vld [vmem:[#allocation7 + $0x48] sm:$0xff] }
  0x72   :  { %v434_v47 = vunpack.c.l.bf16 %v415_v32  ;;  %v435_v48 = vunpack.c.h.bf16 %v415_v32 }
  0x74   :  { %354 = vmatpush1.bf16.msra.mxu0 %v711_v33  ;;  %657 = vmatpush1.bf16.msra.mxu1 %v711_v33 }
  0x77   :  { %356 = vmatmul.mubr.bf16.vlgmr.msra.gmra.mrb[0].mxu0 %v712_v34  ;;  %386 = vmatmul.mubr.bf16.vlgmr.msra.gmra.mrb[0].mxu1 %v715_v35  ;;  %v432_v35 = vunpack.c.l.bf16 %v414_v23 }
  0x78   :  { %365 = vmatprep.mubr.bf16.mxu0 %v718_v36  ;;  %395 = vmatprep.mubr.bf16.mxu1 %v721_v37  ;;  %v433_v36 = vunpack.c.h.bf16 %v414_v23 }
  0x7f   :  { %366 = vmatmul.mubr.bf16.gmra.mrb[4].mxu0 %v720_v38  ;;  %396 = vmatmul.mubr.bf16.gmra.mrb[4].mxu1 %v723_v39 }
  0x80   :  { %375 = vmatprep.mubr.bf16.mxu0 %v724_v40 }
  0x87   :  { %376 = vmatmul.mubr.bf16.gmra.mrb[8].mxu0 %v726_v41 }
 0x14a   :  { %v357_v59 = vpop.f32.mrb[0].mxu0  ;;  %v387_v61 = vpop.f32.mrb[0].mxu1 }
 0x14b   :  { %v358_v1 = vadd.f32 %v357_v59, %v907_v50  ;;  %v359_v2 = vpop.f32.mrb[1].mxu0  ;;  %v388_v3 = vadd.f32 %v387_v61, %v907_v50  ;;  %v389_v4 = vpop.f32.mrb[1].mxu1 }
 0x14c   :  { %v360_v7 = vadd.f32 %v359_v2, %v911_v53  ;;  %v361_v8 = vpop.f32.mrb[2].mxu0  ;;  %v390_v9 = vadd.f32 %v389_v4, %v911_v53  ;;  %v391_v10 = vpop.f32.mrb[2].mxu1  ;;  %v410_v4 = vld [vmem:[#allocation7 + $0x20] sm:$0xff] }
 0x14d   :  { %v436_v13 = vadd.f32 %v416_v54, %v358_v1  ;;  %v362_v14 = vadd.f32 %v361_v8, %v907_v50  ;;  %v363_v15 = vpop.f32.mrb[3].mxu0  ;;  %v448_v16 = vadd.f32 %v428_v57, %v388_v3  ;;  %v392_v17 = vadd.f32 %v391_v10, %v907_v50  ;;  %v393_v18 = vpop.f32.mrb[3].mxu1 }
 0x14e   :  { %v437_v19 = vadd.f32 %v417_v55, %v360_v7  ;;  %v364_v20 = vadd.f32 %v363_v15, %v911_v53  ;;  %v449_v21 = vadd.f32 %v429_v62, %v390_v9  ;;  %v394_v22 = vadd.f32 %v393_v18, %v911_v53 }
 0x14f   :  { %v456_v24 = vmax.f32 %v436_v13, 0.0  ;;  %v438_v25 = vadd.f32 %v418_v56, %v362_v14  ;;  %v468_v26 = vmax.f32 %v448_v16, 0.0  ;;  %v450_v27 = vadd.f32 %v430_v63, %v392_v17  ;;  %v411_v16 = vld [vmem:[#allocation7 + $0x28] sm:$0xff] }
 0x150   :  { %v457_v28 = vmax.f32 %v437_v19, 0.0  ;;  %v439_v29 = vadd.f32 %v419_v60, %v364_v20  ;;  %v469_v30 = vmax.f32 %v449_v21, 0.0  ;;  %v451_v31 = vadd.f32 %v431_v5, %v394_v22 }
 0x151   :  { %v458_v33 = vmax.f32 %v438_v25, 0.0  ;;  %v470_v34 = vmax.f32 %v450_v27, 0.0  ;;  %v425_v19 = vunpack.c.h.bf16 %v410_v4 }
 0x152   :  { %v616_v37 = vpack.c.bf16 %v457_v28, %v456_v24  ;;  %v459_v38 = vmax.f32 %v439_v29, 0.0  ;;  %v622_v39 = vpack.c.bf16 %v469_v30, %v468_v26  ;;  %v367_v40 = vpop.f32.mrb[4].mxu0  ;;  %v471_v41 = vmax.f32 %v451_v31, 0.0  ;;  %v397_v42 = vpop.f32.mrb[4].mxu1 }
 0x153   :  { %v368_v43 = vadd.f32 %v367_v40, %v907_v50  ;;  %v369_v44 = vpop.f32.mrb[5].mxu0  ;;  %v398_v45 = vadd.f32 %v397_v42, %v907_v50  ;;  %v399_v46 = vpop.f32.mrb[5].mxu1  ;;  %v426_v26 = vunpack.c.l.bf16 %v411_v16  ;;  %v427_v29 = vunpack.c.h.bf16 %v411_v16 }
 0x154   :  { %536 = vst [vmem:[#allocation8] sm:$0xff] %v616_v37  ;;  %v617_v49 = vpack.c.bf16 %v459_v38, %v458_v33  ;;  %542 = vst [vmem:[#allocation8 + $0x30] sm:$0xff] %v622_v39  ;;  %v623_v51 = vpack.c.bf16 %v471_v41, %v470_v34  ;;  %v370_v52 = vadd.f32 %v369_v44, %v911_v53  ;;  %v371_v54 = vpop.f32.mrb[6].mxu0  ;;  %v401_v56 = vpop.f32.mrb[6].mxu1 }
 0x155   :  { %v400_v55 = vadd.f32 %v399_v46, %v911_v53  ;;  %v440_v57 = vadd.f32 %v420_v0, %v368_v43  ;;  %v372_v59 = vadd.f32 %v371_v54, %v907_v50  ;;  %v373_v60 = vpop.f32.mrb[7].mxu0  ;;  %v452_v61 = vadd.f32 %v432_v35, %v398_v45  ;;  %v403_v63 = vpop.f32.mrb[7].mxu1 }
 0x156   :  { %v402_v62 = vadd.f32 %v401_v56, %v907_v50  ;;  %537 = vst [vmem:[#allocation8 + $0x8] sm:$0xff] %v617_v49  ;;  %543 = vst [vmem:[#allocation8 + $0x38] sm:$0xff] %v623_v51  ;;  %v441_v1 = vadd.f32 %v421_v6, %v370_v52  ;;  %v374_v2 = vadd.f32 %v373_v60, %v911_v53  ;;  %v424_v6 = vunpack.c.l.bf16 %v410_v4 }
 0x157   :  { %v453_v3 = vadd.f32 %v433_v36, %v400_v55  ;;  %v404_v5 = vadd.f32 %v403_v63, %v911_v53  ;;  %v460_v7 = vmax.f32 %v440_v57, 0.0  ;;  %v442_v8 = vadd.f32 %v422_v11, %v372_v59 }
 0x158   :  { %v472_v9 = vmax.f32 %v452_v61, 0.0  ;;  %v454_v0 = vadd.f32 %v434_v47, %v402_v62  ;;  %v461_v10 = vmax.f32 %v441_v1, 0.0  ;;  %v443_v13 = vadd.f32 %v423_v12, %v374_v2 }
 0x159   :  { %v473_v14 = vmax.f32 %v453_v3, 0.0  ;;  %v455_v15 = vadd.f32 %v435_v48, %v404_v5  ;;  %v462_v17 = vmax.f32 %v442_v8, 0.0 }
 0x15a   :  { %v474_v18 = vmax.f32 %v454_v0, 0.0  ;;  %v618_v20 = vpack.c.bf16 %v461_v10, %v460_v7  ;;  %v463_v21 = vmax.f32 %v443_v13, 0.0  ;;  %v377_v23 = vpop.f32.mrb[8].mxu0 }
 0x15b   :  { %v624_v22 = vpack.c.bf16 %v473_v14, %v472_v9  ;;  %v475_v24 = vmax.f32 %v455_v15, 0.0  ;;  %v378_v11 = vadd.f32 %v377_v23, %v907_v50  ;;  %v379_v25 = vpop.f32.mrb[9].mxu0 }
 0x15c   :  { %538 = vst [vmem:[#allocation8 + $0x10] sm:$0xff] %v618_v20  ;;  %v619_v27 = vpack.c.bf16 %v463_v21, %v462_v17  ;;  %v380_v12 = vadd.f32 %v379_v25, %v911_v53  ;;  %v381_v28 = vpop.f32.mrb[10].mxu0 }
 0x15d   :  { %544 = vst [vmem:[#allocation8 + $0x40] sm:$0xff] %v624_v22  ;;  %v625_v58 = vpack.c.bf16 %v475_v24, %v474_v18  ;;  %v444_v30 = vadd.f32 %v424_v6, %v378_v11  ;;  %v382_v31 = vadd.f32 %v381_v28, %v907_v50  ;;  %v383_v32 = vpop.f32.mrb[11].mxu0 }
 0x15e   :  { %539 = vst [vmem:[#allocation8 + $0x18] sm:$0xff] %v619_v27  ;;  %v445_v33 = vadd.f32 %v425_v19, %v380_v12  ;;  %v384_v34 = vadd.f32 %v383_v32, %v911_v53 }
 0x15f   :  { %545 = vst [vmem:[#allocation8 + $0x48] sm:$0xff] %v625_v58  ;;  %v464_v35 = vmax.f32 %v444_v30, 0.0  ;;  %v446_v36 = vadd.f32 %v426_v26, %v382_v31 }
 0x160   :  { %v465_v37 = vmax.f32 %v445_v33, 0.0  ;;  %v447_v38 = vadd.f32 %v427_v29, %v384_v34 }
 0x161   :  { %v466_v39 = vmax.f32 %v446_v36, 0.0 }
 0x162   :  { %v620_v40 = vpack.c.bf16 %v465_v37, %v464_v35  ;;  %v467_v41 = vmax.f32 %v447_v38, 0.0 }
 0x164   :  { %540 = vst [vmem:[#allocation8 + $0x20] sm:$0xff] %v620_v40  ;;  %v621_v42 = vpack.c.bf16 %v467_v41, %v466_v39 }
 0x166   :  { %541 = vst [vmem:[#allocation8 + $0x28] sm:$0xff] %v621_v42 }
 0x167   :  { %804 = shalt.err (!%p801_p0)
}
 0x168   :  { %s805_s6 = scalar_lea.hbm %s960_s4, 1280 }
 0x169   :  { %p806_p1 = scmp.ne.s32.totalorder %s960_s4, %s805_s6  ;;  %p809_p2 = scmp.lt.u32.totalorder %s805_s6, %s960_s4 }
 0x16b   :  { %p811_p3 = pnand %p809_p2, %p806_p1 }
 0x16d   :  { %814 = shalt.err (!%p811_p3)
}
 0x16e   :  { %557 = dma.vmem_to_hbm [thread:$0]  %s552_s26, 1280, %s960_s4, [#allocation4], %s823_s27, %s823_s27, %s824_s28  }
 0x16f   :  { %819 = dma.done.wait [#allocation4], 1280  }
 0x170   :  { %820 = vsyncadd [#allocation4], 4294966016 }
 0x171   :  { %561 = vsyncpa [#allocation3], 1 }
 0x172   :  { %562 = vsyncpa [#allocation6], 1 }
 0x173   :  { %563 = vsyncpa [#allocation4], 1 }

</bundles_post_ra>
